<compile_context>
chip_gen: v5e
topology: v5e:2x2
jax: 0.10.0
libtpu: 0.0.40
codegen_flags: <defaults>
</compile_context>

<pallas_src>
import math
import functools

import jax
import jax.numpy as jnp
from jax import lax
from jax.experimental import pallas as pl
from jax.experimental.pallas import tpu as pltpu


def mha_kernel(xq_ref, xk_ref, xv_ref,
               wq_ref, bq_ref, wk_ref, bk_ref, wv_ref, bv_ref,
               wo_ref, bo_ref, out_ref, ctx_ref,
               *, n_heads, d_k, approx_recip):
    """Full multi-head attention for one batch element.

    Ref shapes (leading size-1 batch dim squeezed by the BlockSpec):
      xq/xk/xv : (S, D)   activations (compute dtype, f32 or bf16)
      wq/wk/wv : (D, D)   projection weights (compute dtype); wq pre-scaled
      bq/bk/bv : (1, D)   projection biases (f32); bq pre-scaled
      wo       : (D, D)   output projection weight (compute dtype)
      bo       : (1, D)   output projection bias (f32)
      out      : (S, D)   f32 output
      ctx      : (S, D)   VMEM scratch holding the concatenated head contexts
    """
    cdt = xq_ref.dtype  # matmul operand dtype (f32 or bf16)

    # Fused, full-width projections: one lane-dense MXU pass each, f32 accumulation.
    q = jnp.dot(xq_ref[...], wq_ref[...], preferred_element_type=jnp.float32) + bq_ref[...]
    k = jnp.dot(xk_ref[...], wk_ref[...], preferred_element_type=jnp.float32) + bk_ref[...]
    v = jnp.dot(xv_ref[...], wv_ref[...], preferred_element_type=jnp.float32) + bv_ref[...]

    qc = q.astype(cdt)
    kc = k.astype(cdt)
    vc = v.astype(cdt)

    # All heads inside the kernel body; static Python loop -> static lane slices.
    for h in range(n_heads):
        sl = slice(h * d_k, (h + 1) * d_k)
        # q_h @ k_h^T without an explicit transpose (contract last axis of both).
        scores = lax.dot_general(
            qc[:, sl], kc[:, sl],
            dimension_numbers=(((1,), (1,)), ((), ())),
            preferred_element_type=jnp.float32)          # (S, S), already scaled
        m = jnp.max(scores, axis=-1, keepdims=True)
        p = jnp.exp(scores - m)                          # unnormalised probs (f32)
        denom = jnp.sum(p, axis=-1, keepdims=True)       # (S, 1)
        pv = jnp.dot(p.astype(cdt), vc[:, sl],
                     preferred_element_type=jnp.float32)  # (S, d_k)
        # Deferred softmax normalisation: scale the (S, d_k) PV result, not the
        # (S, S) probability matrix.  Exact by default; approx reciprocal is an
        # opt-in fast path (EUP slot) that trades ~1e-3 relative error.
        if approx_recip:
            inv = pl.reciprocal(denom, approx=True)
        else:
            inv = 1.0 / denom
        ctx_ref[:, sl] = (pv * inv).astype(cdt)           # write head's lane slice

    # Single full-width output projection from the resident scratch buffer.
    out = jnp.dot(ctx_ref[...], wo_ref[...],
                  preferred_element_type=jnp.float32) + bo_ref[...]
    out_ref[...] = out.astype(out_ref.dtype)


def multi_headed_attention(query, key, value, params, n_heads,
                           *, compute_dtype=jnp.float32, approx_recip=False):
    """Pallas implementation of MultiHeadedAttention.forward (mask=None, eval).

    compute_dtype: dtype of the matmul operands (use jnp.bfloat16 on
    v5e/v6e/v7x for the fast MXU path; accumulation and softmax stay f32).
    """
    B, S, D = query.shape
    assert D % n_heads == 0
    d_k = D // n_heads
    wq, bq, wk, bk, wv, bv, wo, bo = params

    # Fold the 1/sqrt(d_k) score scale into the Q projection once (wrapper side).
    scale = 1.0 / math.sqrt(d_k)
    wq_s = (wq * scale).astype(compute_dtype)
    bq_s = (bq * scale).reshape(1, D).astype(jnp.float32)
    wk_c = wk.astype(compute_dtype)
    wv_c = wv.astype(compute_dtype)
    wo_c = wo.astype(compute_dtype)
    bk_2d = bk.reshape(1, D).astype(jnp.float32)
    bv_2d = bv.reshape(1, D).astype(jnp.float32)
    bo_2d = bo.reshape(1, D).astype(jnp.float32)

    xq = query.astype(compute_dtype)
    xk = key.astype(compute_dtype)
    xv = value.astype(compute_dtype)

    act_spec = pl.BlockSpec((None, S, D), lambda b: (b, 0, 0))
    w_spec = pl.BlockSpec((D, D), lambda b: (0, 0))    # constant block -> stays in VMEM
    b_spec = pl.BlockSpec((1, D), lambda b: (0, 0))

    out = pl.pallas_call(
        functools.partial(mha_kernel, n_heads=n_heads, d_k=d_k,
                          approx_recip=approx_recip),
        out_shape=jax.ShapeDtypeStruct((B, S, D), jnp.float32),
        grid_spec=pltpu.PrefetchScalarGridSpec(
            num_scalar_prefetch=0,
            grid=(B,),
            in_specs=[
                act_spec, act_spec, act_spec,
                w_spec, b_spec,      # q projection (pre-scaled)
                w_spec, b_spec,      # k projection
                w_spec, b_spec,      # v projection
                w_spec, b_spec,      # output projection
            ],
            out_specs=pl.BlockSpec((None, S, D), lambda b: (b, 0, 0)),
            scratch_shapes=[pltpu.VMEM((S, D), compute_dtype)],  # head-context buffer
        ),
        compiler_params=pltpu.CompilerParams(
            dimension_semantics=("parallel",)),
    )(xq, xk, xv, wq_s, bq_s, wk_c, bk_2d, wv_c, bv_2d, wo_c, bo_2d)
    return out


def reference_mha(query, key, value, params, n_heads):
    """Pure-JAX reference (mirrors the PyTorch forward, mask=None, eval).

    Uses HIGHEST matmul precision so the comparison against the f32 kernel is
    not polluted by TPU default-precision (bf16) matmul rounding.
    """
    wq, bq, wk, bk, wv, bv, wo, bo = params
    B, S, D = query.shape
    d_k = D // n_heads
    hp = lax.Precision.HIGHEST

    def proj(x, w, b):
        y = jnp.dot(x, w, precision=hp) + b
        return y.reshape(B, S, n_heads, d_k).transpose(0, 2, 1, 3)  # (B,H,S,d_k)

    Q, K, V = proj(query, wq, bq), proj(key, wk, bk), proj(value, wv, bv)
    scores = jnp.einsum('bhqd,bhkd->bhqk', Q, K, precision=hp) / math.sqrt(d_k)
    attn = jax.nn.softmax(scores, axis=-1)
    ctx = jnp.einsum('bhqk,bhkd->bhqd', attn, V, precision=hp)
    ctx = ctx.transpose(0, 2, 1, 3).reshape(B, S, D)
    return jnp.dot(ctx, wo, precision=hp) + bo


if __name__ == "__main__":
    B, S, D, H = 2, 8, 32, 4   # batch, seq, d_model, heads

    key0 = jax.random.PRNGKey(0)
    ks = jax.random.split(key0, 12)
    scale = 1.0 / math.sqrt(D)

    query = jax.random.normal(ks[0], (B, S, D), dtype=jnp.float32)
    key_x = jax.random.normal(ks[1], (B, S, D), dtype=jnp.float32)
    value = jax.random.normal(ks[2], (B, S, D), dtype=jnp.float32)

    params = (
        jax.random.normal(ks[3], (D, D), dtype=jnp.float32) * scale,   # wq (in, out)
        jax.random.normal(ks[4], (D,), dtype=jnp.float32) * 0.1,       # bq
        jax.random.normal(ks[5], (D, D), dtype=jnp.float32) * scale,   # wk
        jax.random.normal(ks[6], (D,), dtype=jnp.float32) * 0.1,       # bk
        jax.random.normal(ks[7], (D, D), dtype=jnp.float32) * scale,   # wv
        jax.random.normal(ks[8], (D,), dtype=jnp.float32) * 0.1,       # bv
        jax.random.normal(ks[9], (D, D), dtype=jnp.float32) * scale,   # wo
        jax.random.normal(ks[10], (D,), dtype=jnp.float32) * 0.1,      # bo
    )

    ref = jax.block_until_ready(reference_mha(query, key_x, value, params, H))

    # f32 matmul operands, exact softmax normalisation (validation path).
    out_f32 = multi_headed_attention(query, key_x, value, params, H,
                                     compute_dtype=jnp.float32)
    out_f32 = jax.block_until_ready(out_f32)
    assert out_f32.shape == (B, S, D)
    err_f32 = float(jnp.max(jnp.abs(out_f32 - ref)))
    assert err_f32 < 1e-2, f"f32 path mismatch vs reference: max abs err {err_f32:.3e}"

    # bf16 matmul operands (fast MXU path on v5e/v6e/v7x), f32 accumulation and
    # f32 softmax; looser tolerance for bf16 operand rounding.
    out_bf16 = multi_headed_attention(query, key_x, value, params, H,
                                      compute_dtype=jnp.bfloat16)
    out_bf16 = jax.block_until_ready(out_bf16)
    assert out_bf16.shape == (B, S, D)
    assert bool(jnp.all(jnp.isfinite(out_bf16))), "bf16 path produced non-finite values"
    err_bf16 = float(jnp.max(jnp.abs(out_bf16 - ref)))
    assert err_bf16 < 1.5e-1, f"bf16 path mismatch vs reference: max abs err {err_bf16:.3e}"

    print("KERNEL_OK")
</pallas_src>

<mosaic_0001>
module attributes {stable_mosaic.version = 11 : i64} {
  func.func @mha_kernel(%arg0: i32, %arg1: memref<1x8x32xf32, #tpu.memory_space<vmem>>, %arg2: memref<1x8x32xf32, #tpu.memory_space<vmem>>, %arg3: memref<1x8x32xf32, #tpu.memory_space<vmem>>, %arg4: memref<32x32xf32, #tpu.memory_space<vmem>>, %arg5: memref<1x32xf32, #tpu.memory_space<vmem>>, %arg6: memref<32x32xf32, #tpu.memory_space<vmem>>, %arg7: memref<1x32xf32, #tpu.memory_space<vmem>>, %arg8: memref<32x32xf32, #tpu.memory_space<vmem>>, %arg9: memref<1x32xf32, #tpu.memory_space<vmem>>, %arg10: memref<32x32xf32, #tpu.memory_space<vmem>>, %arg11: memref<1x32xf32, #tpu.memory_space<vmem>>, %arg12: memref<1x8x32xf32, #tpu.memory_space<vmem>>, %arg13: memref<8x32xf32, #tpu.memory_space<vmem>>) attributes {dimension_semantics = [#tpu.dimension_semantics<parallel>], iteration_bounds = array<i64: 2>, scalar_prefetch = 0 : i64, scratch_operands = 1 : i64, tpu.core_type = #tpu.core_type<tc>, window_params = [{transform_indices = @transform_0, window_bounds = array<i64: 1, 8, 32>}, {transform_indices = @transform_1, window_bounds = array<i64: 1, 8, 32>}, {transform_indices = @transform_2, window_bounds = array<i64: 1, 8, 32>}, {pipeline_mode = #tpu.pipeline_mode<synchronous>, transform_indices = @transform_3, window_bounds = array<i64: 32, 32>}, {pipeline_mode = #tpu.pipeline_mode<synchronous>, transform_indices = @transform_4, window_bounds = array<i64: 1, 32>}, {pipeline_mode = #tpu.pipeline_mode<synchronous>, transform_indices = @transform_5, window_bounds = array<i64: 32, 32>}, {pipeline_mode = #tpu.pipeline_mode<synchronous>, transform_indices = @transform_6, window_bounds = array<i64: 1, 32>}, {pipeline_mode = #tpu.pipeline_mode<synchronous>, transform_indices = @transform_7, window_bounds = array<i64: 32, 32>}, {pipeline_mode = #tpu.pipeline_mode<synchronous>, transform_indices = @transform_8, window_bounds = array<i64: 1, 32>}, {pipeline_mode = #tpu.pipeline_mode<synchronous>, transform_indices = @transform_9, window_bounds = array<i64: 32, 32>}, {pipeline_mode = #tpu.pipeline_mode<synchronous>, transform_indices = @transform_10, window_bounds = array<i64: 1, 32>}, {transform_indices = @transform_11, window_bounds = array<i64: 1, 8, 32>}]} {
    %c0 = arith.constant 0 : index
    %c0_0 = arith.constant 0 : index
    %c0_1 = arith.constant 0 : index
    %0 = vector.load %arg1[%c0, %c0_0, %c0_1] : memref<1x8x32xf32, #tpu.memory_space<vmem>>, vector<1x8x32xf32>
    %1 = vector.shape_cast %0 : vector<1x8x32xf32> to vector<8x32xf32>
    %c0_2 = arith.constant 0 : index
    %c0_3 = arith.constant 0 : index
    %2 = vector.load %arg4[%c0_2, %c0_3] : memref<32x32xf32, #tpu.memory_space<vmem>>, vector<32x32xf32>
    %cst = arith.constant dense<0.000000e+00> : vector<8x32xf32>
    %3 = tpu.matmul %1, %2, %cst {dimension_numbers = #tpu.dot_dimension_numbers<[1], [0], [0], [1], [0, 0, 1, 1], [], []>} : vector<8x32xf32>, vector<32x32xf32>, vector<8x32xf32> -> vector<8x32xf32>
    %c0_4 = arith.constant 0 : index
    %c0_5 = arith.constant 0 : index
    %4 = vector.load %arg5[%c0_4, %c0_5] : memref<1x32xf32, #tpu.memory_space<vmem>>, vector<1x32xf32>
    %5 = vector.broadcast %4 : vector<1x32xf32> to vector<8x32xf32>
    %6 = arith.addf %3, %5 : vector<8x32xf32>
    %c0_6 = arith.constant 0 : index
    %c0_7 = arith.constant 0 : index
    %c0_8 = arith.constant 0 : index
    %7 = vector.load %arg2[%c0_6, %c0_7, %c0_8] : memref<1x8x32xf32, #tpu.memory_space<vmem>>, vector<1x8x32xf32>
    %8 = vector.shape_cast %7 : vector<1x8x32xf32> to vector<8x32xf32>
    %c0_9 = arith.constant 0 : index
    %c0_10 = arith.constant 0 : index
    %9 = vector.load %arg6[%c0_9, %c0_10] : memref<32x32xf32, #tpu.memory_space<vmem>>, vector<32x32xf32>
    %cst_11 = arith.constant dense<0.000000e+00> : vector<8x32xf32>
    %10 = tpu.matmul %8, %9, %cst_11 {dimension_numbers = #tpu.dot_dimension_numbers<[1], [0], [0], [1], [0, 0, 1, 1], [], []>} : vector<8x32xf32>, vector<32x32xf32>, vector<8x32xf32> -> vector<8x32xf32>
    %c0_12 = arith.constant 0 : index
    %c0_13 = arith.constant 0 : index
    %11 = vector.load %arg7[%c0_12, %c0_13] : memref<1x32xf32, #tpu.memory_space<vmem>>, vector<1x32xf32>
    %12 = vector.broadcast %11 : vector<1x32xf32> to vector<8x32xf32>
    %13 = arith.addf %10, %12 : vector<8x32xf32>
    %c0_14 = arith.constant 0 : index
    %c0_15 = arith.constant 0 : index
    %c0_16 = arith.constant 0 : index
    %14 = vector.load %arg3[%c0_14, %c0_15, %c0_16] : memref<1x8x32xf32, #tpu.memory_space<vmem>>, vector<1x8x32xf32>
    %15 = vector.shape_cast %14 : vector<1x8x32xf32> to vector<8x32xf32>
    %c0_17 = arith.constant 0 : index
    %c0_18 = arith.constant 0 : index
    %16 = vector.load %arg8[%c0_17, %c0_18] : memref<32x32xf32, #tpu.memory_space<vmem>>, vector<32x32xf32>
    %cst_19 = arith.constant dense<0.000000e+00> : vector<8x32xf32>
    %17 = tpu.matmul %15, %16, %cst_19 {dimension_numbers = #tpu.dot_dimension_numbers<[1], [0], [0], [1], [0, 0, 1, 1], [], []>} : vector<8x32xf32>, vector<32x32xf32>, vector<8x32xf32> -> vector<8x32xf32>
    %c0_20 = arith.constant 0 : index
    %c0_21 = arith.constant 0 : index
    %18 = vector.load %arg9[%c0_20, %c0_21] : memref<1x32xf32, #tpu.memory_space<vmem>>, vector<1x32xf32>
    %19 = vector.broadcast %18 : vector<1x32xf32> to vector<8x32xf32>
    %20 = arith.addf %17, %19 : vector<8x32xf32>
    %21 = vector.extract_strided_slice %6 {offsets = [0, 0], sizes = [8, 8], strides = [1, 1]} : vector<8x32xf32> to vector<8x8xf32>
    %22 = vector.extract_strided_slice %13 {offsets = [0, 0], sizes = [8, 8], strides = [1, 1]} : vector<8x32xf32> to vector<8x8xf32>
    %cst_22 = arith.constant dense<0.000000e+00> : vector<8x8xf32>
    %23 = tpu.matmul %21, %22, %cst_22 {dimension_numbers = #tpu.dot_dimension_numbers<[1], [1], [0], [0], [0, 0, 1, 0], [], []>} : vector<8x8xf32>, vector<8x8xf32>, vector<8x8xf32> -> vector<8x8xf32>
    %cst_23 = arith.constant dense<0xFF800000> : vector<8xf32>
    %24 = vector.multi_reduction <maximumf>, %23, %cst_23 [1] : vector<8x8xf32> to vector<8xf32>
    %25 = vector.shape_cast %24 : vector<8xf32> to vector<8x1xf32>
    %26 = vector.broadcast %25 : vector<8x1xf32> to vector<8x8xf32>
    %27 = arith.subf %23, %26 : vector<8x8xf32>
    %28 = math.exp %27 : vector<8x8xf32>
    %cst_24 = arith.constant dense<0.000000e+00> : vector<8xf32>
    %29 = vector.multi_reduction <add>, %28, %cst_24 [1] : vector<8x8xf32> to vector<8xf32>
    %30 = vector.shape_cast %29 : vector<8xf32> to vector<8x1xf32>
    %31 = vector.extract_strided_slice %20 {offsets = [0, 0], sizes = [8, 8], strides = [1, 1]} : vector<8x32xf32> to vector<8x8xf32>
    %cst_25 = arith.constant dense<0.000000e+00> : vector<8x8xf32>
    %32 = tpu.matmul %28, %31, %cst_25 {dimension_numbers = #tpu.dot_dimension_numbers<[1], [0], [0], [1], [0, 0, 1, 1], [], []>} : vector<8x8xf32>, vector<8x8xf32>, vector<8x8xf32> -> vector<8x8xf32>
    %cst_26 = arith.constant 1.000000e+00 : f32
    %33 = vector.broadcast %cst_26 : f32 to vector<8x1xf32>
    %34 = arith.divf %33, %30 : vector<8x1xf32>
    %35 = vector.broadcast %34 : vector<8x1xf32> to vector<8x8xf32>
    %36 = arith.mulf %32, %35 : vector<8x8xf32>
    %c0_27 = arith.constant 0 : index
    %c0_28 = arith.constant 0 : index
    %37 = vector.load %arg13[%c0_27, %c0_28] : memref<8x32xf32, #tpu.memory_space<vmem>>, vector<8x8xf32>
    tpu.vector_store %arg13[%c0_27, %c0_28], %36 {strides = array<i32>} : memref<8x32xf32, #tpu.memory_space<vmem>>, vector<8x8xf32>,
    %38 = vector.extract_strided_slice %6 {offsets = [0, 8], sizes = [8, 8], strides = [1, 1]} : vector<8x32xf32> to vector<8x8xf32>
    %39 = vector.extract_strided_slice %13 {offsets = [0, 8], sizes = [8, 8], strides = [1, 1]} : vector<8x32xf32> to vector<8x8xf32>
    %cst_29 = arith.constant dense<0.000000e+00> : vector<8x8xf32>
    %40 = tpu.matmul %38, %39, %cst_29 {dimension_numbers = #tpu.dot_dimension_numbers<[1], [1], [0], [0], [0, 0, 1, 0], [], []>} : vector<8x8xf32>, vector<8x8xf32>, vector<8x8xf32> -> vector<8x8xf32>
    %cst_30 = arith.constant dense<0xFF800000> : vector<8xf32>
    %41 = vector.multi_reduction <maximumf>, %40, %cst_30 [1] : vector<8x8xf32> to vector<8xf32>
    %42 = vector.shape_cast %41 : vector<8xf32> to vector<8x1xf32>
    %43 = vector.broadcast %42 : vector<8x1xf32> to vector<8x8xf32>
    %44 = arith.subf %40, %43 : vector<8x8xf32>
    %45 = math.exp %44 : vector<8x8xf32>
    %cst_31 = arith.constant dense<0.000000e+00> : vector<8xf32>
    %46 = vector.multi_reduction <add>, %45, %cst_31 [1] : vector<8x8xf32> to vector<8xf32>
    %47 = vector.shape_cast %46 : vector<8xf32> to vector<8x1xf32>
    %48 = vector.extract_strided_slice %20 {offsets = [0, 8], sizes = [8, 8], strides = [1, 1]} : vector<8x32xf32> to vector<8x8xf32>
    %cst_32 = arith.constant dense<0.000000e+00> : vector<8x8xf32>
    %49 = tpu.matmul %45, %48, %cst_32 {dimension_numbers = #tpu.dot_dimension_numbers<[1], [0], [0], [1], [0, 0, 1, 1], [], []>} : vector<8x8xf32>, vector<8x8xf32>, vector<8x8xf32> -> vector<8x8xf32>
    %cst_33 = arith.constant 1.000000e+00 : f32
    %50 = vector.broadcast %cst_33 : f32 to vector<8x1xf32>
    %51 = arith.divf %50, %47 : vector<8x1xf32>
    %52 = vector.broadcast %51 : vector<8x1xf32> to vector<8x8xf32>
    %53 = arith.mulf %49, %52 : vector<8x8xf32>
    %c0_34 = arith.constant 0 : index
    %c8 = arith.constant 8 : index
    %54 = vector.load %arg13[%c0_34, %c8] : memref<8x32xf32, #tpu.memory_space<vmem>>, vector<8x8xf32>
    tpu.vector_store %arg13[%c0_34, %c8], %53 {strides = array<i32>} : memref<8x32xf32, #tpu.memory_space<vmem>>, vector<8x8xf32>,
    %55 = vector.extract_strided_slice %6 {offsets = [0, 16], sizes = [8, 8], strides = [1, 1]} : vector<8x32xf32> to vector<8x8xf32>
    %56 = vector.extract_strided_slice %13 {offsets = [0, 16], sizes = [8, 8], strides = [1, 1]} : vector<8x32xf32> to vector<8x8xf32>
    %cst_35 = arith.constant dense<0.000000e+00> : vector<8x8xf32>
    %57 = tpu.matmul %55, %56, %cst_35 {dimension_numbers = #tpu.dot_dimension_numbers<[1], [1], [0], [0], [0, 0, 1, 0], [], []>} : vector<8x8xf32>, vector<8x8xf32>, vector<8x8xf32> -> vector<8x8xf32>
    %cst_36 = arith.constant dense<0xFF800000> : vector<8xf32>
    %58 = vector.multi_reduction <maximumf>, %57, %cst_36 [1] : vector<8x8xf32> to vector<8xf32>
    %59 = vector.shape_cast %58 : vector<8xf32> to vector<8x1xf32>
    %60 = vector.broadcast %59 : vector<8x1xf32> to vector<8x8xf32>
    %61 = arith.subf %57, %60 : vector<8x8xf32>
    %62 = math.exp %61 : vector<8x8xf32>
    %cst_37 = arith.constant dense<0.000000e+00> : vector<8xf32>
    %63 = vector.multi_reduction <add>, %62, %cst_37 [1] : vector<8x8xf32> to vector<8xf32>
    %64 = vector.shape_cast %63 : vector<8xf32> to vector<8x1xf32>
    %65 = vector.extract_strided_slice %20 {offsets = [0, 16], sizes = [8, 8], strides = [1, 1]} : vector<8x32xf32> to vector<8x8xf32>
    %cst_38 = arith.constant dense<0.000000e+00> : vector<8x8xf32>
    %66 = tpu.matmul %62, %65, %cst_38 {dimension_numbers = #tpu.dot_dimension_numbers<[1], [0], [0], [1], [0, 0, 1, 1], [], []>} : vector<8x8xf32>, vector<8x8xf32>, vector<8x8xf32> -> vector<8x8xf32>
    %cst_39 = arith.constant 1.000000e+00 : f32
    %67 = vector.broadcast %cst_39 : f32 to vector<8x1xf32>
    %68 = arith.divf %67, %64 : vector<8x1xf32>
    %69 = vector.broadcast %68 : vector<8x1xf32> to vector<8x8xf32>
    %70 = arith.mulf %66, %69 : vector<8x8xf32>
    %c0_40 = arith.constant 0 : index
    %c16 = arith.constant 16 : index
    %71 = vector.load %arg13[%c0_40, %c16] : memref<8x32xf32, #tpu.memory_space<vmem>>, vector<8x8xf32>
    tpu.vector_store %arg13[%c0_40, %c16], %70 {strides = array<i32>} : memref<8x32xf32, #tpu.memory_space<vmem>>, vector<8x8xf32>,
    %72 = vector.extract_strided_slice %6 {offsets = [0, 24], sizes = [8, 8], strides = [1, 1]} : vector<8x32xf32> to vector<8x8xf32>
    %73 = vector.extract_strided_slice %13 {offsets = [0, 24], sizes = [8, 8], strides = [1, 1]} : vector<8x32xf32> to vector<8x8xf32>
    %cst_41 = arith.constant dense<0.000000e+00> : vector<8x8xf32>
    %74 = tpu.matmul %72, %73, %cst_41 {dimension_numbers = #tpu.dot_dimension_numbers<[1], [1], [0], [0], [0, 0, 1, 0], [], []>} : vector<8x8xf32>, vector<8x8xf32>, vector<8x8xf32> -> vector<8x8xf32>
    %cst_42 = arith.constant dense<0xFF800000> : vector<8xf32>
    %75 = vector.multi_reduction <maximumf>, %74, %cst_42 [1] : vector<8x8xf32> to vector<8xf32>
    %76 = vector.shape_cast %75 : vector<8xf32> to vector<8x1xf32>
    %77 = vector.broadcast %76 : vector<8x1xf32> to vector<8x8xf32>
    %78 = arith.subf %74, %77 : vector<8x8xf32>
    %79 = math.exp %78 : vector<8x8xf32>
    %cst_43 = arith.constant dense<0.000000e+00> : vector<8xf32>
    %80 = vector.multi_reduction <add>, %79, %cst_43 [1] : vector<8x8xf32> to vector<8xf32>
    %81 = vector.shape_cast %80 : vector<8xf32> to vector<8x1xf32>
    %82 = vector.extract_strided_slice %20 {offsets = [0, 24], sizes = [8, 8], strides = [1, 1]} : vector<8x32xf32> to vector<8x8xf32>
    %cst_44 = arith.constant dense<0.000000e+00> : vector<8x8xf32>
    %83 = tpu.matmul %79, %82, %cst_44 {dimension_numbers = #tpu.dot_dimension_numbers<[1], [0], [0], [1], [0, 0, 1, 1], [], []>} : vector<8x8xf32>, vector<8x8xf32>, vector<8x8xf32> -> vector<8x8xf32>
    %cst_45 = arith.constant 1.000000e+00 : f32
    %84 = vector.broadcast %cst_45 : f32 to vector<8x1xf32>
    %85 = arith.divf %84, %81 : vector<8x1xf32>
    %86 = vector.broadcast %85 : vector<8x1xf32> to vector<8x8xf32>
    %87 = arith.mulf %83, %86 : vector<8x8xf32>
    %c0_46 = arith.constant 0 : index
    %c24 = arith.constant 24 : index
    %88 = vector.load %arg13[%c0_46, %c24] : memref<8x32xf32, #tpu.memory_space<vmem>>, vector<8x8xf32>
    tpu.vector_store %arg13[%c0_46, %c24], %87 {strides = array<i32>} : memref<8x32xf32, #tpu.memory_space<vmem>>, vector<8x8xf32>,
    %c0_47 = arith.constant 0 : index
    %c0_48 = arith.constant 0 : index
    %89 = vector.load %arg13[%c0_47, %c0_48] : memref<8x32xf32, #tpu.memory_space<vmem>>, vector<8x32xf32>
    %c0_49 = arith.constant 0 : index
    %c0_50 = arith.constant 0 : index
    %90 = vector.load %arg10[%c0_49, %c0_50] : memref<32x32xf32, #tpu.memory_space<vmem>>, vector<32x32xf32>
    %cst_51 = arith.constant dense<0.000000e+00> : vector<8x32xf32>
    %91 = tpu.matmul %89, %90, %cst_51 {dimension_numbers = #tpu.dot_dimension_numbers<[1], [0], [0], [1], [0, 0, 1, 1], [], []>} : vector<8x32xf32>, vector<32x32xf32>, vector<8x32xf32> -> vector<8x32xf32>
    %c0_52 = arith.constant 0 : index
    %c0_53 = arith.constant 0 : index
    %92 = vector.load %arg11[%c0_52, %c0_53] : memref<1x32xf32, #tpu.memory_space<vmem>>, vector<1x32xf32>
    %93 = vector.broadcast %92 : vector<1x32xf32> to vector<8x32xf32>
    %94 = arith.addf %91, %93 : vector<8x32xf32>
    %c0_54 = arith.constant 0 : index
    %c0_55 = arith.constant 0 : index
    %c0_56 = arith.constant 0 : index
    %95 = vector.load %arg12[%c0_54, %c0_55, %c0_56] : memref<1x8x32xf32, #tpu.memory_space<vmem>>, vector<1x8x32xf32>
    %96 = vector.shape_cast %95 : vector<1x8x32xf32> to vector<8x32xf32>
    %97 = vector.shape_cast %94 : vector<8x32xf32> to vector<1x8x32xf32>
    tpu.vector_store %arg12[%c0_54, %c0_55, %c0_56], %97 {strides = array<i32>} : memref<1x8x32xf32, #tpu.memory_space<vmem>>, vector<1x8x32xf32>,
    return
  }
  func.func @transform_0(%arg0: i32) -> (i32, i32, i32) {
    %c0_i32 = arith.constant 0 : i32
    %c0_i32_0 = arith.constant 0 : i32
    %c0_i32_1 = arith.constant 0 : i32
    return %arg0, %c0_i32, %c0_i32_0 : i32, i32, i32
  }
  func.func @transform_1(%arg0: i32) -> (i32, i32, i32) {
    %c0_i32 = arith.constant 0 : i32
    %c0_i32_0 = arith.constant 0 : i32
    %c0_i32_1 = arith.constant 0 : i32
    return %arg0, %c0_i32, %c0_i32_0 : i32, i32, i32
  }
  func.func @transform_2(%arg0: i32) -> (i32, i32, i32) {
    %c0_i32 = arith.constant 0 : i32
    %c0_i32_0 = arith.constant 0 : i32
    %c0_i32_1 = arith.constant 0 : i32
    return %arg0, %c0_i32, %c0_i32_0 : i32, i32, i32
  }
  func.func @transform_3(%arg0: i32) -> (i32, i32) {
    %c0_i32 = arith.constant 0 : i32
    %c0_i32_0 = arith.constant 0 : i32
    %c0_i32_1 = arith.constant 0 : i32
    return %c0_i32, %c0_i32_0 : i32, i32
  }
  func.func @transform_4(%arg0: i32) -> (i32, i32) {
    %c0_i32 = arith.constant 0 : i32
    %c0_i32_0 = arith.constant 0 : i32
    %c0_i32_1 = arith.constant 0 : i32
    return %c0_i32, %c0_i32_0 : i32, i32
  }
  func.func @transform_5(%arg0: i32) -> (i32, i32) {
    %c0_i32 = arith.constant 0 : i32
    %c0_i32_0 = arith.constant 0 : i32
    %c0_i32_1 = arith.constant 0 : i32
    return %c0_i32, %c0_i32_0 : i32, i32
  }
  func.func @transform_6(%arg0: i32) -> (i32, i32) {
    %c0_i32 = arith.constant 0 : i32
    %c0_i32_0 = arith.constant 0 : i32
    %c0_i32_1 = arith.constant 0 : i32
    return %c0_i32, %c0_i32_0 : i32, i32
  }
  func.func @transform_7(%arg0: i32) -> (i32, i32) {
    %c0_i32 = arith.constant 0 : i32
    %c0_i32_0 = arith.constant 0 : i32
    %c0_i32_1 = arith.constant 0 : i32
    return %c0_i32, %c0_i32_0 : i32, i32
  }
  func.func @transform_8(%arg0: i32) -> (i32, i32) {
    %c0_i32 = arith.constant 0 : i32
    %c0_i32_0 = arith.constant 0 : i32
    %c0_i32_1 = arith.constant 0 : i32
    return %c0_i32, %c0_i32_0 : i32, i32
  }
  func.func @transform_9(%arg0: i32) -> (i32, i32) {
    %c0_i32 = arith.constant 0 : i32
    %c0_i32_0 = arith.constant 0 : i32
    %c0_i32_1 = arith.constant 0 : i32
    return %c0_i32, %c0_i32_0 : i32, i32
  }
  func.func @transform_10(%arg0: i32) -> (i32, i32) {
    %c0_i32 = arith.constant 0 : i32
    %c0_i32_0 = arith.constant 0 : i32
    %c0_i32_1 = arith.constant 0 : i32
    return %c0_i32, %c0_i32_0 : i32, i32
  }
  func.func @transform_11(%arg0: i32) -> (i32, i32, i32) {
    %c0_i32 = arith.constant 0 : i32
    %c0_i32_0 = arith.constant 0 : i32
    %c0_i32_1 = arith.constant 0 : i32
    return %arg0, %c0_i32, %c0_i32_0 : i32, i32, i32
  }
}

</mosaic_0001>

<bundles_post_ra>
// kernel: tpu_custom_call.1
= control target key start
LH: loop header
LB: loop body
LE: loop exit
PB: predicated region body
PF: predicated region fallthrough
CT: control target
= control target key end

     0   :  { %s1986_s0 = inlined_call_operand.hbm [shape: f32[2,8,32], index: 0, kind: input, shape index: {}]   ;;  %s1987_s1 = inlined_call_operand.hbm [shape: f32[2,8,32], index: 1, kind: input, shape index: {}]   ;;  %s1988_s2 = inlined_call_operand.hbm [shape: f32[2,8,32], index: 2, kind: input, shape index: {}]   ;;  %s1989_s3 = inlined_call_operand.hbm [shape: f32[32,32], index: 3, kind: input, shape index: {}]   ;;  %s1990_s4 = inlined_call_operand.vmem [shape: f32[1,32], index: 4, kind: input, shape index: {}]   ;;  %s1991_s5 = inlined_call_operand.hbm [shape: f32[32,32], index: 5, kind: input, shape index: {}]   ;;  %s1992_s6 = inlined_call_operand.vmem [shape: f32[1,32], index: 6, kind: input, shape index: {}]   ;;  %s1993_s7 = inlined_call_operand.hbm [shape: f32[32,32], index: 7, kind: input, shape index: {}]   ;;  %s1994_s8 = inlined_call_operand.vmem [shape: f32[1,32], index: 8, kind: input, shape index: {}]   ;;  %s1995_s9 = inlined_call_operand.hbm [shape: f32[32,32], index: 9, kind: input, shape index: {}]   ;;  %s1996_s10 = inlined_call_operand.vmem [shape: f32[1,32], index: 10, kind: input, shape index: {}]   ;;  %s1997_s11 = inlined_call_operand.hbm [shape: f32[2,8,32], index: 11, kind: output, shape index: {}]  }
   0x1   :  { %2009 = sst [smem:[#allocation26_spill]] %s1987_s1 }
   0x2   :  { %2010 = sst [smem:[#allocation27_spill]] %s1989_s3 }
   0x3   :  { %2011 = sst [smem:[#allocation28_spill]] %s1991_s5 }
   0x4   :  { %2012 = sst [smem:[#allocation29_spill]] %s1993_s7 }
   0x5   :  { %2013 = sst [smem:[#allocation30_spill]] %s1995_s9 }
   0x6   :  { %2014 = sst [smem:[#allocation31_spill]] %s1996_s10 }
   0x7   :  { %16 = vsyncpa [#allocation4], 0 }
   0x8   :  { %18 = vsyncpa [#allocation4 + $0x1], 0 }
   0x9   :  { %19 = vsyncpa [#allocation7], 0 }
   0xa   :  { %21 = vsyncpa [#allocation7 + $0x1], 0 }
   0xb   :  { %22 = vsyncpa [#allocation10], 0 }
   0xc   :  { %23 = vsyncpa [#allocation13], 0 }
   0xd   :  { %24 = vsyncpa [#allocation5], 0 }
   0xe   :  { %26 = vsyncpa [#allocation5 + $0x1], 0  ;;  %s1703_s17 = smov 0   ;;  %s1705_s18 = smov 0  }
   0xf   :  { %s1707_s19 = smov 0   ;;  %s1709_s20 = smov 0  }
  0x10 LB: > { %2015 = sst [smem:[#allocation21_spill]] %s1617_s17  ;;  %s1727_s24 = sadd.s32 4294967295, %s1629_s20   ;;  %s1629_s20 = sphi %s1709_s20, %s2043_s20   ;;  %s1625_s19 = sphi %s1707_s19, %s2047_s19   ;;  %s1621_s18 = sphi %s1705_s18, %s2046_s18   ;;  %s1617_s17 = sphi %s1703_s17, %s2045_s17  }
  0x11   : > { %2016 = sst [smem:[#allocation22_spill]] %s1629_s20  ;;  %p1175_p0 = scmp.ge.s32.totalorder %s1629_s20, 1 }
  0x12   : > { %s2017_s3 = sld [smem:[#allocation27_spill]]  ;;  %p2008_p1 = scmp.eq.s32.totalorder %s1727_s24, 0 }
  0x13   : > { %p309_p2 = scmp.lt.s32.totalorder %s1629_s20, 3  ;;  %s1631_s26 = smov [#allocation9]  }
  0x14   : > { %s322_s27 = sshll.u32 %s1631_s26, 4  ;;  %s2019_s7 = sld [smem:[#allocation29_spill]]  ;;  %s323_s27 = int_to_ptr.vmem [resolvable:$true] %s322_s27 }
  0x15   : > { %p1732_p3 = pnand %p1175_p0, %p309_p2  ;;  %s1632_s13 = smov [#allocation12]  }
  0x16   : > { %s356_s14 = sshll.u32 %s1632_s13, 4  ;;  %s1998_s15 = smov 128   ;;  %s357_s14 = int_to_ptr.vmem [resolvable:$true] %s356_s14 }
  0x17   : > { %p1240_p4 = pneg %p1732_p3  ;;  %s2000_s16 = smov 8  }
  0x18   : > { %s320_s23 = sshll.u32 %s2017_s3, 4  ;;  %s1174_s21 = sadd.s32 4294967294, %s1629_s20   ;;  %s321_s23 = int_to_ptr.hbm [resolvable:$true] %s320_s23 }
  0x19   : > { %p1744_p6 = pnand %p1240_p4, %p2008_p1  ;;  %s1760_s22 = sadd.s32 1, %s1629_s20  }
  0x1a   : > { %s354_s30 = sshll.u32 %s2019_s7, 4  ;;  %2021 = sst [smem:[#allocation23_spill]] %s1760_s22  ;;  %s355_s30 = int_to_ptr.hbm [resolvable:$true] %s354_s30 }
  0x1b   : > { %1243 = dma.hbm_to_vmem [thread:$0]  (!%p1744_p6), %s321_s23, 512, %s323_s27, [#allocation10], %s1998_s15, %s1998_s15, %s2000_s16  }
  0x1c   : > { %1249 = dma.hbm_to_vmem [thread:$0]  (!%p1744_p6), %s355_s30, 512, %s357_s14, [#allocation13], %s1998_s15, %s1998_s15, %s2000_s16  }
  0x1d   : > { %s36_s26 = ssub.s32 %s1629_s20, %s1760_s22  ;;  %s39_s28 = sadd.s32 1, %s1625_s19 }
  0x1e   : > { %p37_p7 = scmp.eq.s32.totalorder %s36_s26, 0  ;;  %p46_p8 = scmp.ne.s32.totalorder %s1625_s19, %s1621_s18 }
  0x1f   : > { %p47_p9 = scmp.eq.s32.totalorder %s1629_s20, 0  ;;  %p52_p10 = scmp.ne.s32.totalorder %s1621_s18, %s1617_s17 }
  0x20   : > { %s1771_s23 = scalar_select %p37_p7, %s1625_s19, %s39_s28  }
  0x21   : > { %p48_p11 = por %p47_p9, %p46_p8  ;;  %p1775_p12 = por %p2008_p1, %p52_p10 }
  0x22   : > { %2022 = sst [smem:[#allocation24_spill]] %s1771_s23  ;;  %p296_p13 = scmp.eq.s32.totalorder %s1727_s24, 1 }
  0x23   : > { %p302_p0 = scmp.eq.s32.totalorder %s1174_s21, 1  ;;  %p1271_p2 = scmp.lt.s32.totalorder %s1629_s20, 2 }
  0x24   : > { %s2004_s29 = sand.u32 1, %s1625_s19   ;;  %p1782_p4 = por %p296_p13, %p46_p8 }
  0x25   : > { %p1786_p5 = por %p302_p0, %p52_p10  ;;  %s1792_s14 = sshll.u32 %s2004_s29, 3 }
  0x26   : > { %s1795_s26 = sshll.u32 %s1629_s20, 3  ;;  %p1797_p7 = pnand %p1271_p2, %p48_p11 }
  0x27   : > { %s2025_s13 = scalar_select %p1786_p5, 1, 0 }
  0x28   : > { %s409_s21 = sand.u32 1, %s1629_s20   ;;  %s2028_s1 = sld [smem:[#allocation26_spill]] }
  0x29   : > { %2026 = sst [smem:[#allocation25_spill]] %s2025_s13  ;;  %s413_s23 = scalar_lea.vmem [#allocation6], %s1792_s14 }
  0x2a   : > { %s421_s22 = sshll.u32 %s413_s23, 4  ;;  %s1807_s29 = scalar_lea.sflag [#allocation7], %s409_s21  ;;  %s422_s22 = int_to_ptr.vmem [resolvable:$true] %s421_s22 }
  0x2b   : > { %p1405_p9 = pneg %p1797_p7 }
  0x2e   : > { %s417_s3 = scalar_lea.hbm %s2028_s1, %s1795_s26 }
  0x2f   : > { %s419_s7 = sshll.u32 %s417_s3, 4  ;;  %s1408_s3 = scalar_lea.hbm %s2028_s1, 16  ;;  %s420_s7 = int_to_ptr.hbm [resolvable:$true] %s419_s7 }
  0x30   : > { %s1401_s13 = sshra.s32 %s420_s7, 4  ;;  %s1402_s13 = int_to_ptr.hbm [resolvable:$true] %s1401_s13 }
  0x31   : > { %s1403_s17 = scalar_lea.hbm %s1402_s13, 8  ;;  %p1409_p13 = scmp.lt.s32.totalorder %s1402_s13, %s2028_s1 }
  0x32   : > { %p1404_p8 = scmp.ne.s32.totalorder %s1402_s13, %s1403_s17  ;;  %p1410_p0 = scmp.lt.s32.totalorder %s1408_s3, %s1403_s17 }
  0x34   : > { %p1406_p10 = pnand %p1405_p9, %p1404_p8  ;;  %p1411_p2 = por %p1410_p0, %p1409_p13 }
  0x36   : > { %p1407_p11 = pneg %p1406_p10 }
  0x38   : > { %p1412_p1 = pnand %p1411_p2, %p1407_p11 }
  0x3a   : > { %1415 = shalt.err (!%p1412_p1)
}
  0x3b   : > { %1259 = dma.hbm_to_vmem [thread:$0]  (!%p1797_p7), %s420_s7, 128, %s422_s22, %s1807_s29  }
  0x3c   : > { %s2029_s5 = sld [smem:[#allocation28_spill]]  ;;  %s1635_s15 = smov [#allocation11]  }
  0x3d   : > { %s339_s13 = sshll.u32 %s1635_s15, 4  ;;  %s2030_s9 = sld [smem:[#allocation30_spill]]  ;;  %s340_s13 = int_to_ptr.vmem [resolvable:$true] %s339_s13 }
  0x3e   : > { %s2031_s23 = smov 8   ;;  %s2032_s1 = smov 128  }
  0x3f   : > { %s1636_s7 = smov [#allocation14]   ;;  %s398_s15 = scalar_lea.hbm %s1986_s0, %s1795_s26 }
  0x40   : > { %s373_s22 = sshll.u32 %s1636_s7, 4  ;;  %s394_s17 = scalar_lea.vmem [#allocation3], %s1792_s14  ;;  %s374_s22 = int_to_ptr.vmem [resolvable:$true] %s373_s22 }
  0x41   : > { %s402_s3 = sshll.u32 %s394_s17, 4  ;;  %s403_s3 = int_to_ptr.vmem [resolvable:$true] %s402_s3 }
  0x42   : > { %s337_s20 = sshll.u32 %s2029_s5, 4  ;;  %s400_s5 = sshll.u32 %s398_s15, 4  ;;  %s338_s20 = int_to_ptr.hbm [resolvable:$true] %s337_s20  ;;  %s401_s5 = int_to_ptr.hbm [resolvable:$true] %s400_s5 }
  0x43   : > { %s371_s16 = sshll.u32 %s2030_s9, 4  ;;  %s1491_s9 = sshra.s32 %s401_s5, 4  ;;  %s372_s16 = int_to_ptr.hbm [resolvable:$true] %s371_s16  ;;  %s1492_s9 = int_to_ptr.hbm [resolvable:$true] %s1491_s9 }
  0x44   : > { %1246 = dma.hbm_to_vmem [thread:$0]  (!%p1744_p6), %s338_s20, 512, %s340_s13, [#allocation10], %s2032_s1, %s2032_s1, %s2031_s23  }
  0x45   : > { %1252 = dma.hbm_to_vmem [thread:$0]  (!%p1744_p6), %s372_s16, 512, %s374_s22, [#allocation13], %s2032_s1, %s2032_s1, %s2031_s23  }
  0x46   : > { %s2033_s20 = sand.u32 1, %s1625_s19   ;;  %s1493_s7 = scalar_lea.hbm %s1492_s9, 8 }
  0x47   : > { %s391_s13 = scalar_lea.sflag [#allocation4], %s2033_s20  ;;  %p1494_p1 = scmp.ne.s32.totalorder %s1492_s9, %s1493_s7 }
  0x48   : > { %s1498_s16 = scalar_lea.hbm %s1986_s0, 16  ;;  %p1499_p6 = scmp.lt.s32.totalorder %s1492_s9, %s1986_s0 }
  0x49   : > { %p1496_p8 = pnand %p1494_p1, %p1405_p9  ;;  %p1500_p11 = scmp.lt.s32.totalorder %s1498_s16, %s1493_s7 }
  0x4b   : > { %p1497_p10 = pneg %p1496_p8  ;;  %p1501_p13 = por %p1500_p11, %p1499_p6 }
  0x4d   : > { %p1502_p0 = pnand %p1501_p13, %p1497_p10 }
  0x4f   : > { %1505 = shalt.err (!%p1502_p0)
}
  0x50   : > { %1256 = dma.hbm_to_vmem [thread:$0]  (!%p1797_p7), %s401_s5, 128, %s403_s3, %s391_s13  }
  0x51   : > { %s436_s15 = scalar_lea.hbm %s1988_s2, %s1795_s26  ;;  %s432_s17 = scalar_lea.vmem [#allocation8], %s1792_s14 }
  0x52   : > { %s440_s20 = sshll.u32 %s432_s17, 4  ;;  %s438_s1 = sshll.u32 %s436_s15, 4  ;;  %s441_s20 = int_to_ptr.vmem [resolvable:$true] %s440_s20  ;;  %s439_s1 = int_to_ptr.hbm [resolvable:$true] %s438_s1 }
  0x53   : > { %s1521_s9 = sshra.s32 %s439_s1, 4  ;;  %s1528_s5 = scalar_lea.hbm %s1988_s2, 16  ;;  %s1522_s9 = int_to_ptr.hbm [resolvable:$true] %s1521_s9 }
  0x54   : > { %s1523_s7 = scalar_lea.hbm %s1522_s9, 8  ;;  %p1529_p10 = scmp.lt.s32.totalorder %s1522_s9, %s1988_s2 }
  0x55   : > { %p1524_p2 = scmp.ne.s32.totalorder %s1522_s9, %s1523_s7  ;;  %p1530_p6 = scmp.lt.s32.totalorder %s1528_s5, %s1523_s7 }
  0x57   : > { %p1526_p1 = pnand %p1524_p2, %p1405_p9  ;;  %p1531_p11 = por %p1530_p6, %p1529_p10 }
  0x59   : > { %p1527_p8 = pneg %p1526_p1 }
  0x5b   : > { %p1532_p13 = pnand %p1531_p11, %p1527_p8 }
  0x5d   : > { %1535 = shalt.err (!%p1532_p13)
}
  0x5e   : > { %1262 = dma.hbm_to_vmem [thread:$0]  (!%p1797_p7), %s439_s1, 128, %s441_s20, %s1807_s29  }
  0x5f   : > { %449 = sbr.rel (%p1732_p3) target bundleno = 1032 (0x408), region = 64  ;;  %s1877_s14 = sand.u32 (!%p1732_p3), 1, %s1621_s18  }
  0x60   : > { %s1880_s26 = sshll.u32 (!%p1732_p3), %s1877_s14, 3  ;;  %s452_s23 = scalar_lea.sflag (!%p1732_p3), [#allocation4], %s1877_s14 }
  0x61   : > { %s455_s22 = scalar_lea.vmem (!%p1732_p3), [#allocation3], %s1880_s26 }
  0x64   : > { %1596 = dma.done.wait (%p1775_p12), %s452_s23, 128  }
  0x65   : > { %1598 = vsyncadd (%p1775_p12), %s452_s23, 4294967168  ;;  %s461_s25 = sand.u32 1, %s1727_s24   ;;  %s465_s28 = scalar_lea.vmem [#allocation6], %s1880_s26 }
  0x66   : > { %s462_s29 = scalar_lea.sflag [#allocation7], %s461_s25 }
  0x67   : > { %1600 = dma.done.wait (%p1775_p12), %s462_s29, 256  }
  0x68   : > { %1602 = vsyncadd (%p1775_p12), %s462_s29, 4294967040  ;;  %s475_s10 = scalar_lea.vmem [#allocation8], %s1880_s26  ;;  %p2034_p3 = scmp.eq.s32.totalorder %s1727_s24, 0 }
  0x6a   : > { %1604 = dma.done.wait (%p2034_p3), [#allocation10], 1024   ;;  %p2035_p7 = pmov %p2034_p3 }
  0x6b   : > { %p2036_p9 = pmov %p2034_p3 }
  0x6c   : > { %1606 = vsyncadd (%p2035_p7), [#allocation10], 4294966272 }
  0x6d   : > { %1608 = dma.done.wait (%p2036_p9), [#allocation13], 1024   ;;  %p2037_p0 = pmov %p2034_p3 }
  0x6e   : > { %v582_v0 = vld [vmem:[#allocation11 + $0x18] sm:$0xff]  ;;  %v581_v1 = vld [vmem:[#allocation11 + $0x10] sm:$0xff]  ;;  %v580_v4 = vld [vmem:[#allocation11 + $0x8] sm:$0xff]  ;;  %vm554_vm0 = vcmask 261120   ;;  %vm642_vm1 = vcmask 64512   ;;  %s1637_s20 = smov 104  }
  0x6f   : > { %1610 = vsyncadd (%p2037_p0), [#allocation13], 4294966272  ;;  %v549_v2 = vld [vmem:[#allocation9 + $0x18] sm:$0xff]  ;;  %602 = vmatpush.msra.mxu1 %v582_v0  ;;  %v548_v3 = vld [vmem:[#allocation9 + $0x10] sm:$0xff]  ;;  %s1638_s1 = smov 120   ;;  %s1639_s9 = smov 112  }
  0x70   : > { %570 = vmatpush.msra.mxu0 %v549_v2  ;;  %v547_v5 = vld [vmem:[#allocation9 + $0x8] sm:$0xff]  ;;  %v579_v6 = vld [vmem:[#allocation11] sm:$0xff]  ;;  %v545_v9 = vld [vmem:[%s455_s22] sm:$0xff]  ;;  %s1640_s16 = smov 8   ;;  %s1641_s5 = smov 16  }
  0x71   : > { %603 = vmatpush.msra.mxu1 %v581_v1  ;;  %v546_v7 = vld [vmem:[#allocation9] sm:$0xff]  ;;  %v1321_v10 = vld [vmem:[%s1992_s6] ss:$0 sm:$0xff]  ;;  %v614_v16 = vld [vmem:[#allocation12 + $0x18] sm:$0xff]  ;;  %s1642_s3 = smov 24   ;;  %s1213_s13 = sshll.u32 %s1727_s24, 3 }
  0x72   : > { %571 = vmatpush.msra.mxu0 %v548_v3  ;;  %v578_v8 = vld [vmem:[%s465_s28] sm:$0xff]  ;;  %v613_v17 = vld [vmem:[#allocation12 + $0x10] sm:$0xff]  ;;  %634 = vmatpush.msra.mxu2 %v614_v16  ;;  %s1018_s25 = scalar_lea.hbm %s1997_s11, %s1213_s13  ;;  %s544_s27 = scalar_lea.vmem [#allocation15], %s1880_s26 }
  0x73   : > { %604 = vmatpush.msra.mxu1 %v580_v4  ;;  %v1322_v11 = vld [vmem:[%s1990_s4] ss:$0 sm:$0xff]  ;;  %v611_v19 = vld [vmem:[#allocation12] sm:$0xff]  ;;  %v610_v20 = vld [vmem:[%s475_s10] sm:$0xff]  ;;  %s2038_s10 = sld [smem:[#allocation31_spill]]  ;;  %s1020_s21 = sshll.u32 %s544_s27, 4  ;;  %s1021_s21 = int_to_ptr.vmem [resolvable:$true] %s1020_s21 }
  0x74   : > { %572 = vmatpush.msra.mxu0 %v547_v5  ;;  %v612_v18 = vld [vmem:[#allocation12 + $0x8] sm:$0xff]  ;;  %635 = vmatpush.msra.mxu2 %v613_v17  ;;  %s1022_s15 = sshll.u32 %s1018_s25, 4  ;;  %s1008_s17 = scalar_lea.sflag [#allocation5], %s1877_s14  ;;  %s1023_s15 = int_to_ptr.hbm [resolvable:$true] %s1022_s15 }
  0x75   : > { %605 = vmatpush.msra.mxu1 %v579_v6  ;;  %v1323_v29 = vld [vmem:[%s1994_s8] ss:$0 sm:$0xff]  ;;  %s1565_s24 = sshra.s32 %s1023_s15, 4  ;;  %s1571_s26 = scalar_lea.hbm %s1997_s11, 16  ;;  %s1566_s24 = int_to_ptr.hbm [resolvable:$true] %s1565_s24 }
  0x76   : > { %573 = vmatpush.msra.mxu0 %v546_v7  ;;  %1197 = vmatmul.msk.f32.vlgmr.msra.gmra.mxu1 %vm554_vm0, %v578_v8  ;;  %p1572_p8 = scmp.lt.s32.totalorder %s1566_s24, %s1997_s11 }
  0x77   : > { %1196 = vmatmul.msk.f32.vlgmr.msra.gmra.mxu0 %vm554_vm0, %v545_v9  ;;  %636 = vmatpush.msra.mxu2 %v612_v18 }
  0x79   : > { %637 = vmatpush.msra.mxu2 %v611_v19 }
  0x7a   : > { %1198 = vmatmul.msk.f32.vlgmr.msra.gmra.mxu2 %vm554_vm0, %v610_v20 }
  0xf3   : > { %v607_v12 = vpop.f32.mrf.mxu1 }
  0xf4   : > { %v575_v13 = vpop.f32.mrf.mxu0  ;;  %v608_v14 = vadd.f32 %v1321_v10, %v607_v12 }
  0xf5   : > { %v576_v15 = vadd.f32 %v1322_v11, %v575_v13 }
  0xf6   : > { %891 = vrot.lane.b32.xlu2 %v608_v14, %s1637_s20  ;;  %720 = vrot.lane.b32.xlu1 %v608_v14, %s1638_s1 }
  0xf7   : > { %806 = vrot.lane.b32.xlu0 %v608_v14, %s1639_s9  ;;  %1199 = vmatpush.xpose.msk.msra.mxu3 %vm642_vm1, %v608_v14 }
  0xfa   : > { %1200 = vmatmul.msk.f32.vlgmr.msra.gmra.mxu3 %vm642_vm1, %v576_v15 }
  0xfd   : > { %v639_v30 = vpop.f32.mrf.mxu2 }
  0xfe   : > { %889 = vrot.lane.b32.xlu2 %v576_v15, %s1637_s20  ;;  %718 = vrot.lane.b32.xlu1 %v576_v15, %s1638_s1  ;;  %v640_v31 = vadd.f32 %v1323_v29, %v639_v30 }
  0xff   : > { %804 = vrot.lane.b32.xlu0 %v576_v15, %s1639_s9 }
 0x100   : > { %696 = vmatpush.msrb.mxu3 %v640_v31 }
 0x150   : > { %v892_v22 = vpop.permute.xlu2 %891 }
 0x158   : > { %v890_v26 = vpop.permute.xlu2 %889 }
 0x168   : > { %v721_v21 = vpop.permute.xlu1 %720 }
 0x169   : > { %v807_v23 = vpop.permute.xlu0 %806  ;;  %1202 = vmatpush.xpose.msk.msrb.mxu0 %vm642_vm1, %v721_v21 }
 0x16a   : > { %1205 = vmatpush.xpose.msk.msrb.mxu2 %vm642_vm1, %v807_v23 }
 0x16d   : > { %1208 = vmatpush.xpose.msk.msra.mxu0 %vm642_vm1, %v892_v22 }
 0x170   : > { %v719_v24 = vpop.permute.xlu1 %718 }
 0x171   : > { %v805_v25 = vpop.permute.xlu0 %804  ;;  %1203 = vmatmul.msk.f32.vlgmr.msrb.gmra.mxu0 %vm642_vm1, %v719_v24 }
 0x172   : > { %1206 = vmatmul.msk.f32.vlgmr.msrb.gmra.mxu2 %vm642_vm1, %v805_v25 }
 0x179   : > { %1209 = vmatmul.msk.f32.vlgmr.msra.gmra.mxu0 %vm642_vm1, %v890_v26 }
 0x17d   : > { %v666_v27 = vpop.f32.mrf.mxu3 }
 0x17e   : > { %v669_v28 = vsel %vm642_vm1, %v666_v27, -inf }
 0x17f   : > { %670 = vmax.xlane.f32.xlu0 %v669_v28 }
 0x193   : > { %756 = vrot.lane.b32.xlu0 %v640_v31, %s1638_s1 }
 0x1ee   : > { %v743_v32 = vpop.f32.mrf.mxu0 }
 0x1ef   : > { %v746_v33 = vsel %vm642_vm1, %v743_v32, -inf }
 0x1f0   : > { %747 = vmax.xlane.f32.xlu1 %v746_v33 }
 0x1f2   : > { %v671_v34 = vpop.xlane.xlu0 %670 }
 0x1f3   : > { %v672_v35 = vsub.f32 %v666_v27, %v671_v34 }
 0x1f5   : > { %v673_v36 = vmul.f32 1.442695, %v672_v35  ;;  %v829_v37 = vpop.f32.mrf.mxu2 }
 0x1f6   : > { %v832_v38 = vsel %vm642_vm1, %v829_v37, -inf  ;;  %v914_v39 = vpop.f32.mrf.mxu0 }
 0x1f7   : > { %1325 = vpow2.f32 %v673_v36  ;;  %833 = vmax.xlane.f32.xlu2 %v832_v38  ;;  %v917_v41 = vsel %vm642_vm1, %v914_v39, -inf }
 0x1fd   : > { %v1326_v40 = vpop.eup %1325 }
 0x1fe   : > { %1201 = vmatmul.msk.f32.vlgmr.msrb.gmra.mxu3 %vm642_vm1, %v1326_v40  ;;  %v675_v56 = vsel %vm642_vm1, %v1326_v40, 0.0 }
 0x1ff   : > { %918 = vmax.xlane.f32.xlu2 %v917_v41 }
 0x205   : > { %v757_v42 = vpop.permute.xlu0 %756 }
 0x206   : > { %777 = vmatpush.msrb.mxu1 %v757_v42 }
 0x209   : > { %841 = vrot.lane.b32.xlu1 %v640_v31, %s1639_s9 }
 0x217   : > { %926 = vrot.lane.b32.xlu2 %v640_v31, %s1637_s20  ;;  %s1567_s20 = scalar_lea.hbm %s1566_s24, 8 }
 0x218   : > { %p1568_p12 = scmp.ne.s32.totalorder %s1566_s24, %s1567_s20  ;;  %p1573_p10 = scmp.lt.s32.totalorder %s1571_s26, %s1567_s20 }
 0x21a   : > { %p1569_p2 = pnand %p1568_p12, %p1782_p4  ;;  %p1574_p6 = por %p1573_p10, %p1572_p8 }
 0x21c   : > { %p1570_p1 = pneg %p1569_p2 }
 0x21e   : > { %p1575_p11 = pnand %p1574_p6, %p1570_p1 }
 0x263   : > { %v748_v43 = vpop.xlane.xlu1 %747 }
 0x264   : > { %v749_v44 = vsub.f32 %v743_v32, %v748_v43 }
 0x266   : > { %v750_v45 = vmul.f32 1.442695, %v749_v44 }
 0x268   : > { %1327 = vpow2.f32 %v750_v45 }
 0x26a   : > { %v834_v46 = vpop.xlane.xlu2 %833 }
 0x26b   : > { %v835_v47 = vsub.f32 %v829_v37, %v834_v46 }
 0x26d   : > { %v836_v48 = vmul.f32 1.442695, %v835_v47 }
 0x26e   : > { %v1328_v49 = vpop.eup %1327 }
 0x26f   : > { %1329 = vpow2.f32 %v836_v48  ;;  %1204 = vmatmul.msk.f32.vlgmr.msrb.gmra.mxu1 %vm642_vm1, %v1328_v49  ;;  %v752_v50 = vsel %vm642_vm1, %v1328_v49, 0.0  ;;  %v978_v49 = vld [vmem:[#allocation14 + $0x18] sm:$0xff] }
 0x270   : > { %753 = vadd.xlane.f32.xlu0 %v752_v50  ;;  %v977_v50 = vld [vmem:[#allocation14 + $0x10] sm:$0xff]  ;;  %998 = vmatpush.msra.mxu2 %v978_v49 }
 0x272   : > { %v919_v51 = vpop.xlane.xlu2 %918  ;;  %999 = vmatpush.msra.mxu2 %v977_v50 }
 0x273   : > { %v920_v52 = vsub.f32 %v914_v39, %v919_v51  ;;  %v976_v51 = vld [vmem:[#allocation14 + $0x8] sm:$0xff] }
 0x274   : > { %1000 = vmatpush.msra.mxu2 %v976_v51 }
 0x275   : > { %v1330_v53 = vpop.eup %1329  ;;  %v921_v54 = vmul.f32 1.442695, %v920_v52  ;;  %v975_v52 = vld [vmem:[#allocation14] sm:$0xff] }
 0x276   : > { %v838_v55 = vsel %vm642_vm1, %v1330_v53, 0.0  ;;  %1001 = vmatpush.msra.mxu2 %v975_v52 }
 0x277   : > { %1331 = vpow2.f32 %v921_v54  ;;  %839 = vadd.xlane.f32.xlu1 %v838_v55 }
 0x278   : > { %676 = vadd.xlane.f32.xlu0 %v675_v56 }
 0x27a   : > { %v927_v57 = vpop.permute.xlu2 %926 }
 0x27b   : > { %947 = vmatpush.msra.mxu1 %v927_v57  ;;  %v842_v58 = vpop.permute.xlu1 %841  ;;  %v1324_v57 = vld [vmem:[%s2038_s10] ss:$0 sm:$0xff] }
 0x27c   : > { %862 = vmatpush.msra.mxu3 %v842_v58 }
 0x27d   : > { %v1332_v59 = vpop.eup %1331  ;;  %1207 = vmatmul.msk.f32.vlgmr.msra.gmra.mxu3 %vm642_vm1, %v1330_v53 }
 0x27e   : > { %1210 = vmatmul.msk.f32.vlgmr.msra.gmra.mxu1 %vm642_vm1, %v1332_v59  ;;  %v923_v60 = vsel %vm642_vm1, %v1332_v59, 0.0 }
 0x27f   : > { %924 = vadd.xlane.f32.xlu2 %v923_v60 }
 0x281   : > { %v698_v23 = vpop.f32.mrf.mxu3 }
 0x2e3   : > { %v754_v61 = vpop.xlane.xlu0 %753 }
 0x2e4   : > { %1333 = vrcp.f32 %v754_v61  ;;  %v793_v3 = vand.u32 2147483648, %v754_v61  ;;  %v791_v5 = vand.u32 2147483647, %v754_v61  ;;  %vm787_vm3 = vweird.f32 %v754_v61 }
 0x2e6   : > { %v794_v10 = vor.u32 1.1754944e-38, %v793_v3  ;;  %vm792_vm5 = vcmp.eq.f32.partialorder %v791_v5, 8.507059e+37 }
 0x2ea   : > { %v1334_v62 = vpop.eup %1333  ;;  %v840_v63 = vpop.xlane.xlu1 %839 }
 0x2eb   : > { %v783_v0 = vmul.f32 %v1334_v62, %v754_v61  ;;  %1335 = vrcp.f32 %v840_v63  ;;  %v677_v1 = vpop.xlane.xlu0 %676  ;;  %vm788_vm2 = vweird.f32 %v1334_v62  ;;  %v878_v29 = vand.u32 2147483648, %v840_v63 }
 0x2ec   : > { %1337 = vrcp.f32 %v677_v1  ;;  %vm789_vm4 = vmor %vm787_vm3, %vm788_vm2  ;;  %v779_v15 = vpop.f32.mrf.mxu1  ;;  %v712_v19 = vand.u32 2147483648, %v677_v1  ;;  %v710_v22 = vand.u32 2147483647, %v677_v1  ;;  %vm706_vm7 = vweird.f32 %v677_v1 }
 0x2ed   : > { %v784_v2 = vsub.f32 1.0, %v783_v0  ;;  %vm872_vm11 = vweird.f32 %v840_v63  ;;  %v876_v31 = vand.u32 2147483647, %v840_v63  ;;  %v879_v39 = vor.u32 1.1754944e-38, %v878_v29 }
 0x2ee   : > { %v713_v27 = vor.u32 1.1754944e-38, %v712_v19  ;;  %vm711_vm10 = vcmp.eq.f32.partialorder %v710_v22, 8.507059e+37 }
 0x2ef   : > { %v785_v4 = vmul.f32 %v1334_v62, %v784_v2  ;;  %vm877_vm14 = vcmp.eq.f32.partialorder %v876_v31, 8.507059e+37 }
 0x2f1   : > { %v1336_v6 = vpop.eup %1335  ;;  %v786_v7 = vadd.f32 %v1334_v62, %v785_v4 }
 0x2f2   : > { %v1338_v8 = vpop.eup %1337  ;;  %v868_v9 = vmul.f32 %v1336_v6, %v840_v63  ;;  %v925_v11 = vpop.xlane.xlu2 %924  ;;  %vm873_vm8 = vweird.f32 %v1336_v6 }
 0x2f3   : > { %v702_v12 = vmul.f32 %v1338_v8, %v677_v1  ;;  %v790_v13 = vsel %vm789_vm4, %v1334_v62, %v786_v7  ;;  %1339 = vrcp.f32 %v925_v11  ;;  %vm707_vm6 = vweird.f32 %v1338_v8  ;;  %vm874_vm12 = vmor %vm872_vm11, %vm873_vm8 }
 0x2f4   : > { %v869_v14 = vsub.f32 1.0, %v868_v9  ;;  %v795_v16 = vsel %vm792_vm5, %v794_v10, %v790_v13  ;;  %vm708_vm9 = vmor %vm706_vm7, %vm707_vm6  ;;  %v963_v34 = vand.u32 2147483648, %v925_v11  ;;  %v961_v38 = vand.u32 2147483647, %v925_v11 }
 0x2f5   : > { %v703_v17 = vsub.f32 1.0, %v702_v12  ;;  %v797_v18 = vmul.f32 %v795_v16, %v779_v15  ;;  %vm957_vm15 = vweird.f32 %v925_v11  ;;  %vm887_vm4 = vcmask 195712  }
 0x2f6   : > { %v870_v20 = vmul.f32 %v1336_v6, %v869_v14  ;;  %v964_v43 = vor.u32 1.1754944e-38, %v963_v34  ;;  %vm962_vm3 = vcmp.eq.f32.partialorder %v961_v38, 8.507059e+37  ;;  %vm972_vm5 = vcmask 261312  }
 0x2f7   : > { %v704_v21 = vmul.f32 %v1338_v8, %v703_v17  ;;  %799 = vrot.lane.b32.xlu1 %v797_v18, %s1640_s16 }
 0x2f8   : > { %v871_v26 = vadd.f32 %v1336_v6, %v870_v20 }
 0x2f9   : > { %v1340_v24 = vpop.eup %1339  ;;  %v705_v25 = vadd.f32 %v1338_v8, %v704_v21 }
 0x2fa   : > { %v953_v28 = vmul.f32 %v1340_v24, %v925_v11  ;;  %v875_v35 = vsel %vm874_vm12, %v1336_v6, %v871_v26  ;;  %vm958_vm13 = vweird.f32 %v1340_v24 }
 0x2fb   : > { %v709_v30 = vsel %vm708_vm9, %v1338_v8, %v705_v25  ;;  %v880_v42 = vsel %vm877_vm14, %v879_v39, %v875_v35  ;;  %vm959_vm2 = vmor %vm957_vm15, %vm958_vm13  ;;  %v949_v46 = vpop.f32.mrf.mxu1 }
 0x2fc   : > { %v714_v32 = vsel %vm711_vm10, %v713_v27, %v709_v30  ;;  %v954_v33 = vsub.f32 1.0, %v953_v28 }
 0x2fd   : > { %v716_v36 = vmul.f32 %v714_v32, %v698_v23 }
 0x2fe   : > { %v955_v37 = vmul.f32 %v1340_v24, %v954_v33 }
 0x2ff   : > { %717 = vst.msk [vmem:[#allocation2] sm:$0xff] %vm642_vm1, %v716_v36  ;;  %vm802_vm1 = vcmask 130112  }
 0x300   : > { %v956_v40 = vadd.f32 %v1340_v24, %v955_v37  ;;  %v864_v41 = vpop.f32.mrf.mxu3 }
 0x301   : > { %v882_v44 = vmul.f32 %v880_v42, %v864_v41 }
 0x302   : > { %v960_v45 = vsel %vm959_vm2, %v1340_v24, %v956_v40 }
 0x303   : > { %v965_v47 = vsel %vm962_vm3, %v964_v43, %v960_v45  ;;  %884 = vrot.lane.b32.xlu0 %v882_v44, %s1641_s5 }
 0x304   : > { %v967_v48 = vmul.f32 %v965_v47, %v949_v46 }
 0x306   : > { %969 = vrot.lane.b32.xlu2 %v967_v48, %s1642_s3 }
 0x360   : > { %v970_v55 = vpop.permute.xlu2 %969 }
 0x369   : > { %v800_v53 = vpop.permute.xlu1 %799 }
 0x36a   : > { %803 = vst.msk [vmem:[#allocation2] sm:$0xff] %vm802_vm1, %v800_v53 }
 0x375   : > { %v885_v54 = vpop.permute.xlu0 %884 }
 0x376   : > { %888 = vst.msk [vmem:[#allocation2] sm:$0xff] %vm887_vm4, %v885_v54 }
 0x377   : > { %973 = vst.msk [vmem:[#allocation2] sm:$0xff] %vm972_vm5, %v970_v55 }
 0x37e   : > { %v974_v56 = vld [vmem:[#allocation2] sm:$0xff] }
 0x37f   : > { %1211 = vmatmul.msk.f32.vlgmr.msra.gmra.mxu2 %vm554_vm0, %v974_v56 }
 0x402   : > { %v1003_v58 = vpop.f32.mrf.mxu2 }
 0x403   : > { %v1004_v59 = vadd.f32 %v1324_v57, %v1003_v58 }
 0x405   : > { %1006 = vst.msk [vmem:[%s544_s27] sm:$0xff] %vm554_vm0, %v1004_v59 }
 0x406   : > { %1578 = shalt.err (!%p1575_p11)
}
 0x407   : > { %1238 = dma.vmem_to_hbm [thread:$0]  (%p1782_p4), %s1021_s21, 128, %s1023_s15, %s1008_s17  }
 0x408 PF: > { %s2039_s14 = sld [smem:[#allocation21_spill]] }
 0x409   : > { %s2041_s5 = sld [smem:[#allocation22_spill]] }
 0x40e   : > { %s1034_s3 = sand.u32 1, %s2039_s14  }
 0x40f   : > { %p2042_p13 = scmp.ge.s32.totalorder %s2041_s5, 2  ;;  %s1035_s13 = scalar_lea.sflag [#allocation5], %s1034_s3 }
 0x411   : > { %p1264_p3 = pnand %p2042_p13, %p1786_p5 }
 0x413   : > { %p1265_p7 = pneg %p1264_p3 }
 0x415   : > { %1612 = dma.done.wait (%p1265_p7), %s1035_s13, 128  }
 0x416   : > { %1614 = vsyncadd (%p1265_p7), %s1035_s13, 4294967168  ;;  %s2043_s20 = sld [smem:[#allocation23_spill]]  ;;  %s2045_s17 = smov %s1621_s18 }
 0x417   : > { %s2044_s23 = sld [smem:[#allocation24_spill]]  ;;  %s2046_s18 = smov %s1625_s19 }
 0x41c   : > { %p29_p9 = scmp.ge.s32.totalorder %s2043_s20, 4  }
 0x41d   : > { %s2047_s19 = smov %s2044_s23 }
 0x41e   :  { %31 = sbr.rel (!%p29_p9) target bundleno = 16 (0x10), region = 149 }
 0x423   :  { %1041 = vsyncpa [#allocation4], 1 }
 0x424   :  { %1043 = vsyncpa [#allocation4 + $0x1], 1 }
 0x425   :  { %1044 = vsyncpa [#allocation7], 1 }
 0x426   :  { %1046 = vsyncpa [#allocation7 + $0x1], 1 }
 0x427   :  { %1047 = vsyncpa [#allocation10], 1 }
 0x428   :  { %1048 = vsyncpa [#allocation13], 1 }
 0x429   :  { %1049 = vsyncpa [#allocation5], 1 }
 0x42a   :  { %1051 = vsyncpa [#allocation5 + $0x1], 1 }

</bundles_post_ra>
